<compile_context>
chip_gen: v7x
topology: tpu7x:2x2x1
jax: 0.10.0
libtpu: 0.0.40
codegen_flags: <defaults>
</compile_context>

<pallas_src>
import numpy as np
import jax
import jax.numpy as jnp
from jax.experimental import pallas as pl
from jax.experimental.pallas import tpu as pltpu


def _block_diag(a, b):
    r1, c1 = a.shape
    r2, c2 = b.shape
    out = np.zeros((r1 + r2, c1 + c2), dtype=np.float32)
    out[:r1, :c1] = a
    out[r1:, c1:] = b
    return out


def build_ffnnpc_layers(Amat, bec, dimension_space, number_potentials, key):
    """Replicates FFNNPC.__init__ layer construction (torch (out, in) orientation).

    Returns a list of (W (out,in) f32, b (out,) f32 or None, relu_after) where
    relu_after mirrors forward(): ReLU is applied after layers 1..n-2 only.
    """
    A1 = np.array([[1.0, -1.0], [0.0, 1.0], [0.0, -1.0]], dtype=np.float32)
    A2 = np.array([[1.0, 1.0, -1.0]], dtype=np.float32)
    helpA = [A1]
    helpB = [A2]
    i = 2
    while i <= number_potentials // 2:
        A, B = A1, A2
        j = 1
        while j <= i - 1:
            A = _block_diag(A, A1)
            B = _block_diag(B, A2)
            j += 1
        helpA.append(A)
        helpB.append(B)
        i *= 2

    layers = [(np.asarray(Amat, np.float32), np.asarray(bec, np.float32))]
    layers.append((helpA[-1], None))  # helpA[-1] linear, bias=False
    k = number_potentials
    l = 0
    while k > 2:
        A = helpA[-2 - l]
        B = helpB[-1 - l]
        C = (A @ B).astype(np.float32)
        # torch keeps nn.Linear's default-init bias here: uniform(-1/sqrt(fan_in), ...).
        key, sub = jax.random.split(key)
        bound = 1.0 / np.sqrt(C.shape[1])
        bias = np.asarray(
            jax.random.uniform(sub, (C.shape[0],), minval=-bound, maxval=bound),
            dtype=np.float32)
        layers.append((C, bias))
        k = int(k / 2)
        l += 1
    layers.append((A2, None))  # final A2linear, bias=False

    n = len(layers)
    out = []
    for idx, (w, b) in enumerate(layers):
        relu = 1 <= idx <= n - 2
        out.append((w.astype(np.float32),
                    None if b is None else np.asarray(b, np.float32),
                    relu))
    return out


def pack_params(layers):
    """Fuse layer0 into layer1 (affine, no ReLU in between) and zero-pad all widths
    to a common multiple-of-8 size P so the kernel loop is a uniform resident slab."""
    (w0, b0, _), (w1, b1, relu1) = layers[0], layers[1]
    assert b1 is None
    w_f = (w1 @ w0).astype(np.float32)            # (out1, D)
    b_f = (w1 @ b0).astype(np.float32)            # (out1,)
    fused = [(w_f, b_f, relu1)] + list(layers[2:])

    D = w_f.shape[1]
    P = max(max(w.shape[0] for (w, _, _) in fused),
            max(w.shape[1] for (w, _, _) in fused[1:]))
    P = int(np.ceil(P / 8) * 8)

    # First (fused) layer: exact K = D, rows padded to P.
    w_first = np.zeros((P, D), np.float32)
    w_first[: w_f.shape[0]] = w_f
    b_first = np.zeros((P, 1), np.float32)
    b_first[: b_f.shape[0], 0] = b_f

    rest = fused[1:]
    n_rest = len(rest)
    w_pack = np.zeros((n_rest, P, P), np.float32)
    b_pack = np.zeros((n_rest, P, 1), np.float32)
    for i, (w, b, _) in enumerate(rest):
        w_pack[i, : w.shape[0], : w.shape[1]] = w
        if b is not None:
            b_pack[i, : b.shape[0], 0] = b

    relu_flags = tuple(r for (_, _, r) in fused)
    out_rows = fused[-1][0].shape[0]
    return (jnp.asarray(w_first), jnp.asarray(b_first),
            jnp.asarray(w_pack), jnp.asarray(b_pack),
            relu_flags, out_rows, D, P)


def _make_kernel(n_rest, relu_flags, out_rows):
    def kernel(x_ref, w0_ref, b0_ref, wp_ref, bp_ref, o_ref):
        # x_ref: (D, tb)  -- batch on lanes
        # w0_ref: (P, D), b0_ref: (P, 1)
        # wp_ref: (n_rest, P, P), bp_ref: (n_rest, P, 1)
        h = jnp.dot(w0_ref[...], x_ref[...],
                    preferred_element_type=jnp.float32) + b0_ref[...]
        if relu_flags[0]:
            h = jnp.maximum(h, 0.0)
        for li in range(n_rest):
            h = jnp.dot(wp_ref[li], h,
                        preferred_element_type=jnp.float32) + bp_ref[li]
            if relu_flags[li + 1]:
                h = jnp.maximum(h, 0.0)
        # lane-dense store of the valid output rows (padded rows are exact zeros)
        o_ref[...] = h[:out_rows, :]
    return kernel


def ffnnpc_forward(x, packed, *, tb=512):
    w0, b0, wp, bp, relu_flags, out_rows, D, P = packed
    B, Din = x.shape
    assert Din == D

    # Batch padded up to a multiple of 128 lanes; padding rows are harmless (per-row net).
    B_pad = int(np.ceil(B / 128) * 128)
    tb_eff = min(tb, B_pad)
    tb_eff = max(128, (tb_eff // 128) * 128)
    while B_pad % tb_eff:
        tb_eff -= 128
    # Keep >=2 grid steps when possible so v7x's two TensorCores are both used.
    if B_pad // tb_eff < 2 and B_pad >= 256 and (B_pad // 2) % 128 == 0:
        tb_eff = B_pad // 2

    # Wrapper-side layout plumbing: present x as a lane-dense (D, B_pad) slab.
    xt = jnp.zeros((D, B_pad), jnp.float32).at[:, :B].set(x.T.astype(jnp.float32))

    n_rest = wp.shape[0]
    kernel = _make_kernel(n_rest, relu_flags, out_rows)

    out = pl.pallas_call(
        kernel,
        out_shape=jax.ShapeDtypeStruct((out_rows, B_pad), jnp.float32),
        grid=(B_pad // tb_eff,),
        in_specs=[
            pl.BlockSpec((D, tb_eff), lambda i: (0, i)),   # x tile (batch on lanes)
            pl.BlockSpec(w0.shape, lambda i: (0, 0)),      # resident, never re-fetched
            pl.BlockSpec(b0.shape, lambda i: (0, 0)),
            pl.BlockSpec(wp.shape, lambda i: (0, 0, 0)),   # packed weight slab
            pl.BlockSpec(bp.shape, lambda i: (0, 0, 0)),   # packed bias slab
        ],
        out_specs=pl.BlockSpec((out_rows, tb_eff), lambda i: (0, i)),
        compiler_params=pltpu.CompilerParams(dimension_semantics=("parallel",)),
    )(xt, w0, b0, wp, bp)

    # Back to the torch output layout (B, out_rows); drop batch padding.
    return out[:, :B].T


def ffnnpc_ref(x, layers):
    """Pure-JAX reference following the ORIGINAL (unfused) torch chain."""
    h = x.astype(jnp.float32)
    for (w, b, relu) in layers:
        h = h @ jnp.asarray(w).T
        if b is not None:
            h = h + jnp.asarray(b)
        if relu:
            h = jnp.maximum(h, 0.0)
    return h


if __name__ == "__main__":
    key = jax.random.PRNGKey(0)
    dimension_space = 4
    number_potentials = 8   # power of 2, as the construction assumes
    batch = 256             # -> two 128-lane tiles (>=2 parallel grid steps)

    k_A, k_b, k_x, k_bias = jax.random.split(key, 4)
    Amat = np.asarray(jax.random.normal(k_A, (number_potentials, dimension_space)),
                      np.float32)
    bec = np.asarray(jax.random.normal(k_b, (number_potentials,)), np.float32)

    layers = build_ffnnpc_layers(Amat, bec, dimension_space, number_potentials, k_bias)
    packed = pack_params(layers)
    x = jax.random.normal(k_x, (batch, dimension_space), jnp.float32)

    out = jax.block_until_ready(ffnnpc_forward(x, packed, tb=512))
    ref = ffnnpc_ref(x, layers)
    np.testing.assert_allclose(np.asarray(out), np.asarray(ref), rtol=1e-5, atol=1e-5)

    # TODO(synk): modelPhi/modelPsi/initialWB are trivial sub-paths / parameter rescales of
    # the same affine chain and are not separately kernelized.
    print("KERNEL_OK")
</pallas_src>

<mosaic_0001>
module attributes {stable_mosaic.version = 11 : i64} {
  func.func @kernel(%arg0: i32, %arg1: memref<4x128xf32, #tpu.memory_space<vmem>>, %arg2: memref<16x4xf32, #tpu.memory_space<vmem>>, %arg3: memref<16x1xf32, #tpu.memory_space<vmem>>, %arg4: memref<3x16x16xf32, #tpu.memory_space<vmem>>, %arg5: memref<3x16x1xf32, #tpu.memory_space<vmem>>, %arg6: memref<1x128xf32, #tpu.memory_space<vmem>>) attributes {dimension_semantics = [#tpu.dimension_semantics<parallel>], iteration_bounds = array<i64: 2>, scalar_prefetch = 0 : i64, scratch_operands = 0 : i64, tpu.core_type = #tpu.core_type<tc>, window_params = [{transform_indices = @transform_0, window_bounds = array<i64: 4, 128>}, {pipeline_mode = #tpu.pipeline_mode<synchronous>, transform_indices = @transform_1, window_bounds = array<i64: 16, 4>}, {pipeline_mode = #tpu.pipeline_mode<synchronous>, transform_indices = @transform_2, window_bounds = array<i64: 16, 1>}, {pipeline_mode = #tpu.pipeline_mode<synchronous>, transform_indices = @transform_3, window_bounds = array<i64: 3, 16, 16>}, {pipeline_mode = #tpu.pipeline_mode<synchronous>, transform_indices = @transform_4, window_bounds = array<i64: 3, 16, 1>}, {transform_indices = @transform_5, window_bounds = array<i64: 1, 128>}]} {
    %c0 = arith.constant 0 : index
    %c0_0 = arith.constant 0 : index
    %0 = vector.load %arg2[%c0, %c0_0] : memref<16x4xf32, #tpu.memory_space<vmem>>, vector<16x4xf32>
    %c0_1 = arith.constant 0 : index
    %c0_2 = arith.constant 0 : index
    %1 = vector.load %arg1[%c0_1, %c0_2] : memref<4x128xf32, #tpu.memory_space<vmem>>, vector<4x128xf32>
    %cst = arith.constant dense<0.000000e+00> : vector<16x128xf32>
    %2 = tpu.matmul %0, %1, %cst {dimension_numbers = #tpu.dot_dimension_numbers<[1], [0], [0], [1], [0, 0, 1, 1], [], []>} : vector<16x4xf32>, vector<4x128xf32>, vector<16x128xf32> -> vector<16x128xf32>
    %c0_3 = arith.constant 0 : index
    %c0_4 = arith.constant 0 : index
    %3 = vector.load %arg3[%c0_3, %c0_4] : memref<16x1xf32, #tpu.memory_space<vmem>>, vector<16x1xf32>
    %4 = vector.broadcast %3 : vector<16x1xf32> to vector<16x128xf32>
    %5 = arith.addf %2, %4 : vector<16x128xf32>
    %cst_5 = arith.constant 0.000000e+00 : f32
    %6 = vector.broadcast %cst_5 : f32 to vector<16x128xf32>
    %7 = arith.maximumf %5, %6 : vector<16x128xf32>
    %c0_6 = arith.constant 0 : index
    %c0_7 = arith.constant 0 : index
    %c0_8 = arith.constant 0 : index
    %8 = vector.load %arg4[%c0_6, %c0_7, %c0_8] : memref<3x16x16xf32, #tpu.memory_space<vmem>>, vector<1x16x16xf32>
    %9 = vector.shape_cast %8 : vector<1x16x16xf32> to vector<16x16xf32>
    %cst_9 = arith.constant dense<0.000000e+00> : vector<16x128xf32>
    %10 = tpu.matmul %9, %7, %cst_9 {dimension_numbers = #tpu.dot_dimension_numbers<[1], [0], [0], [1], [0, 0, 1, 1], [], []>} : vector<16x16xf32>, vector<16x128xf32>, vector<16x128xf32> -> vector<16x128xf32>
    %c0_10 = arith.constant 0 : index
    %c0_11 = arith.constant 0 : index
    %c0_12 = arith.constant 0 : index
    %11 = vector.load %arg5[%c0_10, %c0_11, %c0_12] : memref<3x16x1xf32, #tpu.memory_space<vmem>>, vector<1x16x1xf32>
    %12 = vector.shape_cast %11 : vector<1x16x1xf32> to vector<16x1xf32>
    %13 = vector.broadcast %12 : vector<16x1xf32> to vector<16x128xf32>
    %14 = arith.addf %10, %13 : vector<16x128xf32>
    %cst_13 = arith.constant 0.000000e+00 : f32
    %15 = vector.broadcast %cst_13 : f32 to vector<16x128xf32>
    %16 = arith.maximumf %14, %15 : vector<16x128xf32>
    %c1 = arith.constant 1 : index
    %c0_14 = arith.constant 0 : index
    %c0_15 = arith.constant 0 : index
    %17 = vector.load %arg4[%c1, %c0_14, %c0_15] : memref<3x16x16xf32, #tpu.memory_space<vmem>>, vector<1x16x16xf32>
    %18 = vector.shape_cast %17 : vector<1x16x16xf32> to vector<16x16xf32>
    %cst_16 = arith.constant dense<0.000000e+00> : vector<16x128xf32>
    %19 = tpu.matmul %18, %16, %cst_16 {dimension_numbers = #tpu.dot_dimension_numbers<[1], [0], [0], [1], [0, 0, 1, 1], [], []>} : vector<16x16xf32>, vector<16x128xf32>, vector<16x128xf32> -> vector<16x128xf32>
    %c1_17 = arith.constant 1 : index
    %c0_18 = arith.constant 0 : index
    %c0_19 = arith.constant 0 : index
    %20 = vector.load %arg5[%c1_17, %c0_18, %c0_19] : memref<3x16x1xf32, #tpu.memory_space<vmem>>, vector<1x16x1xf32>
    %21 = vector.shape_cast %20 : vector<1x16x1xf32> to vector<16x1xf32>
    %22 = vector.broadcast %21 : vector<16x1xf32> to vector<16x128xf32>
    %23 = arith.addf %19, %22 : vector<16x128xf32>
    %cst_20 = arith.constant 0.000000e+00 : f32
    %24 = vector.broadcast %cst_20 : f32 to vector<16x128xf32>
    %25 = arith.maximumf %23, %24 : vector<16x128xf32>
    %c2 = arith.constant 2 : index
    %c0_21 = arith.constant 0 : index
    %c0_22 = arith.constant 0 : index
    %26 = vector.load %arg4[%c2, %c0_21, %c0_22] : memref<3x16x16xf32, #tpu.memory_space<vmem>>, vector<1x16x16xf32>
    %27 = vector.shape_cast %26 : vector<1x16x16xf32> to vector<16x16xf32>
    %cst_23 = arith.constant dense<0.000000e+00> : vector<16x128xf32>
    %28 = tpu.matmul %27, %25, %cst_23 {dimension_numbers = #tpu.dot_dimension_numbers<[1], [0], [0], [1], [0, 0, 1, 1], [], []>} : vector<16x16xf32>, vector<16x128xf32>, vector<16x128xf32> -> vector<16x128xf32>
    %c2_24 = arith.constant 2 : index
    %c0_25 = arith.constant 0 : index
    %c0_26 = arith.constant 0 : index
    %29 = vector.load %arg5[%c2_24, %c0_25, %c0_26] : memref<3x16x1xf32, #tpu.memory_space<vmem>>, vector<1x16x1xf32>
    %30 = vector.shape_cast %29 : vector<1x16x1xf32> to vector<16x1xf32>
    %31 = vector.broadcast %30 : vector<16x1xf32> to vector<16x128xf32>
    %32 = arith.addf %28, %31 : vector<16x128xf32>
    %33 = vector.extract_strided_slice %32 {offsets = [0, 0], sizes = [1, 128], strides = [1, 1]} : vector<16x128xf32> to vector<1x128xf32>
    %c0_27 = arith.constant 0 : index
    %c0_28 = arith.constant 0 : index
    %34 = vector.load %arg6[%c0_27, %c0_28] : memref<1x128xf32, #tpu.memory_space<vmem>>, vector<1x128xf32>
    tpu.vector_store %arg6[%c0_27, %c0_28], %33 {strides = array<i32>} : memref<1x128xf32, #tpu.memory_space<vmem>>, vector<1x128xf32>,
    return
  }
  func.func @transform_0(%arg0: i32) -> (i32, i32) {
    %c0_i32 = arith.constant 0 : i32
    %c0_i32_0 = arith.constant 0 : i32
    return %c0_i32, %arg0 : i32, i32
  }
  func.func @transform_1(%arg0: i32) -> (i32, i32) {
    %c0_i32 = arith.constant 0 : i32
    %c0_i32_0 = arith.constant 0 : i32
    %c0_i32_1 = arith.constant 0 : i32
    return %c0_i32, %c0_i32_0 : i32, i32
  }
  func.func @transform_2(%arg0: i32) -> (i32, i32) {
    %c0_i32 = arith.constant 0 : i32
    %c0_i32_0 = arith.constant 0 : i32
    %c0_i32_1 = arith.constant 0 : i32
    return %c0_i32, %c0_i32_0 : i32, i32
  }
  func.func @transform_3(%arg0: i32) -> (i32, i32, i32) {
    %c0_i32 = arith.constant 0 : i32
    %c0_i32_0 = arith.constant 0 : i32
    %c0_i32_1 = arith.constant 0 : i32
    %c0_i32_2 = arith.constant 0 : i32
    return %c0_i32, %c0_i32_0, %c0_i32_1 : i32, i32, i32
  }
  func.func @transform_4(%arg0: i32) -> (i32, i32, i32) {
    %c0_i32 = arith.constant 0 : i32
    %c0_i32_0 = arith.constant 0 : i32
    %c0_i32_1 = arith.constant 0 : i32
    %c0_i32_2 = arith.constant 0 : i32
    return %c0_i32, %c0_i32_0, %c0_i32_1 : i32, i32, i32
  }
  func.func @transform_5(%arg0: i32) -> (i32, i32) {
    %c0_i32 = arith.constant 0 : i32
    %c0_i32_0 = arith.constant 0 : i32
    return %c0_i32, %arg0 : i32, i32
  }
}

</mosaic_0001>

<bundles_post_ra>
// kernel: tpu_custom_call.1
= control target key start
LH: loop header
LB: loop body
LE: loop exit
PB: predicated region body
PF: predicated region fallthrough
CT: control target
= control target key end

     0   :  { %10 = vsyncpa [#allocation3], 0  ;;  %s1052_s0 = inlined_call_operand.vmem [shape: f32[4,256], index: 0, kind: input, shape index: {}]   ;;  %s1053_s1 = inlined_call_operand.vmem [shape: f32[16,4], index: 1, kind: input, shape index: {}]   ;;  %s1054_s2 = inlined_call_operand.vmem [shape: f32[16,1], index: 2, kind: input, shape index: {}]   ;;  %s1055_s3 = inlined_call_operand.vmem [shape: f32[3,16,16], index: 3, kind: input, shape index: {}]   ;;  %s1056_s4 = inlined_call_operand.vmem [shape: f32[3,16,1], index: 4, kind: input, shape index: {}]   ;;  %s1057_s5 = inlined_call_operand.hbm [shape: f32[1,256], index: 5, kind: output, shape index: {}]  }
   0x1   :  { %12 = vsyncpa [#allocation3 + $0x1], 0  ;;  %s899_s18 = smov 0   ;;  %s901_s19 = smov 0  }
   0x2   :  { %s903_s20 = smov 0   ;;  %s905_s21 = smov 0  }
   0x3 LB: > { %s920_s22 = sadd.s32 4294967295, %s865_s21   ;;  %s683_s23 = sadd.s32 4294967294, %s865_s21   ;;  %s865_s21 = sphi %s905_s21, %s1063_s21   ;;  %s861_s20 = sphi %s903_s20, %s1062_s20   ;;  %s857_s19 = sphi %s901_s19, %s1061_s19   ;;  %s853_s18 = sphi %s899_s18, %s1060_s18  }
   0x4   : > { %s924_s24 = sadd.s32 1, %s865_s21   ;;  %s135_s25 = sadd.s32 1, %s861_s20 }
   0x5   : > { %s132_s26 = ssub.s32 %s865_s21, %s924_s24  ;;  %p145_p0 = scmp.ne.s32.totalorder %s861_s20, %s857_s19 }
   0x6   : > { %p133_p1 = scmp.eq.s32.totalorder %s132_s26, 0  ;;  %p146_p2 = scmp.eq.s32.totalorder %s920_s22, 1 }
   0x7   : > { %p151_p3 = scmp.ne.s32.totalorder %s857_s19, %s853_s18  ;;  %p152_p4 = scmp.eq.s32.totalorder %s683_s23, 1 }
   0x8   : > { %s935_s27 = scalar_select %p133_p1, %s861_s20, %s135_s25  }
   0x9   : > { %p937_p5 = por %p146_p2, %p145_p0  ;;  %p941_p6 = por %p152_p4, %p151_p3 }
   0xa   : > { %p686_p7 = scmp.ge.s32.totalorder %s865_s21, 1  ;;  %p189_p8 = scmp.lt.s32.totalorder %s865_s21, 3 }
   0xc   : > { %p190_p9 = pnand %p686_p7, %p189_p8 }
   0xd   : > { %p215_p10 = scmp.lt.s32.totalorder (!%p190_p9), %s920_s22, 1  ;;  %v219_v0 = vld [vmem:[%s1053_s1] sm:$0xff] (!%p190_p9)  ;;  %vm234_vm0 = vcmask (!%p190_p9), 31744   ;;  %v867_v1 = vmov (!%p190_p9), 0   ;;  %v223_v3 = vld [vmem:[%s1054_s2 + $0x8] sm:$0xff] (!%p190_p9)  ;;  %vm241_vm1 = vcmask (!%p190_p9), 1043456  }
   0xe   : > { %193 = sbr.rel (%p190_p9) target bundleno = 926 (0x39e), region = 40  ;;  %725 = vmatprep.mubr.msk.f32.mxu0 (!%p190_p9), %vm234_vm0, %v219_v0  ;;  %801 = vset.pattern.permute.xlu0 (!%p190_p9), %v867_v1  ;;  %v222_v2 = vld [vmem:[%s1054_s2] sm:$0xff] (!%p190_p9)  ;;  %v220_v5 = vld [vmem:[%s1053_s1 + $0x8] sm:$0xff] (!%p190_p9)  ;;  %v695_v6 = vld [vmem:[%s1056_s4 + $0x10] sm:$0xff] (!%p190_p9)  ;;  %vm336_vm2 = vcmask (!%p190_p9), 130048   ;;  %s213_s8 = sand.u32 (!%p190_p9), 1, %s857_s19  }
   0xf   : > { %226 = vperm.xlu0 (!%p190_p9), %801, %v222_v2   ;;  %802 = vset.pattern.permute.xlu1 (!%p190_p9), %v867_v1  ;;  %v701_v7 = vld [vmem:[%s1056_s4 + $0x20] sm:$0xff] (!%p190_p9)  ;;  %v325_v10 = vld [vmem:[%s1056_s4 + $0x8] sm:$0xff] (!%p190_p9)  ;;  %v696_v11 = vld [vmem:[%s1056_s4 + $0x18] sm:$0xff] (!%p190_p9)  ;;  %s214_s10 = scalar_lea.vmem (!%p190_p9), [#allocation2], %s213_s8 }
  0x10   : > { %v322_v8 = vld [vmem:[%s1055_s3] sm:$0xff] (!%p190_p9)  ;;  %v323_v21 = vld [vmem:[%s1055_s3 + $0x8] sm:$0xff] (!%p190_p9)  ;;  %v693_v22 = vld [vmem:[%s1055_s3 + $0x10] sm:$0xff] (!%p190_p9)  ;;  %s628_s11 = sshll.u32 (!%p190_p9), %s214_s10, 4  ;;  %s1012_s11 = int_to_ptr.vmem [resolvable:$true] %s628_s11 }
  0x11   : > { %732 = vmatprep.mubr.msk.f32.mxu1 (!%p190_p9), %vm336_vm2, %v322_v8  ;;  %v324_v9 = vld [vmem:[%s1056_s4] sm:$0xff] (!%p190_p9)  ;;  %v694_v32 = vld [vmem:[%s1055_s3 + $0x18] sm:$0xff] (!%p190_p9)  ;;  %v700_v43 = vld [vmem:[%s1055_s3 + $0x28] sm:$0xff] (!%p190_p9)  ;;  %s803_s16 = scalar_lea.vmem (!%p190_p9), %s1012_s11, 16 }
  0x12   : > { %328 = vperm.xlu1 (!%p190_p9), %802, %v324_v9   ;;  %v699_v33 = vld [vmem:[%s1055_s3 + $0x20] sm:$0xff] (!%p190_p9)  ;;  %p804_p11 = scmp.ne.s32.totalorder (!%p190_p9), %s1012_s11, %s803_s16 }
  0x13   : > { %231 = vperm.xlu0 (!%p190_p9), %801, %v223_v3  }
  0x14   : > { %p805_p12 = pnand (!%p190_p9), %p804_p11, %p937_p5 }
  0x15   : > { %s216_s9 = scalar_select %p215_p10, %s920_s22, 1 }
  0x16   : > { %333 = vperm.xlu1 %802, %v325_v10   ;;  %p806_p13 = pneg %p805_p12 }
  0x17   : > { %s687_s12 = sshll.u32 %s216_s9, 2  ;;  %428 = vperm.xlu0 %801, %v695_v6   ;;  %s705_s9 = sshll.u32 %s920_s22, 4 }
  0x18   : > { %s218_s15 = scalar_lea.vmem %s1052_s0, %s687_s12  ;;  %s1010_s14 = scalar_lea.hbm %s1057_s5, %s705_s9 }
  0x19   : > { %v221_v4 = vld [vmem:[%s218_s15] sm:$0xf]  ;;  %s616_s15 = scalar_lea.sflag [#allocation3], %s213_s8  ;;  %s868_s22 = smov [#allocation2]  }
  0x1a   : > { %723 = vmatprep.subr.msk.mxu0 %vm241_vm1, %v221_v4  ;;  %433 = vperm.xlu1 %802, %v696_v11   ;;  %s807_s17 = sshll.u32 %s868_s22, 4  ;;  %s808_s17 = int_to_ptr.vmem [resolvable:$false] %s807_s17 }
  0x1b   : > { %724 = vmatpush3.msk.msra.mxu0 %vm241_vm1, %v221_v4  ;;  %527 = vperm.xlu0 %801, %v701_v7   ;;  %s809_s23 = scalar_lea.vmem %s808_s17, 32  ;;  %p810_p0 = scmp.lt.s32.totalorder %s1012_s11, %s808_s17 }
  0x1c   : > { %726 = vmatmul.mubr.msk.f32.vlgmr.msra.gmra.mrb[0].mxu0 %vm234_vm0, %v220_v5  ;;  %p811_p1 = scmp.lt.s32.totalorder %s809_s23, %s803_s16 }
  0x1d   : > { %739 = vmatprep.mubr.msk.f32.mxu0 %vm336_vm2, %v693_v22 }
  0x1e   : > { %p812_p2 = por %p811_p1, %p810_p0 }
  0x20   : > { %p813_p3 = pnand %p812_p2, %p806_p13 }
  0x8e   : > { %v227_v12 = vpop.permute.xlu0 %226 }
  0x91   : > { %v329_v23 = vpop.permute.xlu1 %328 }
  0x92   : > { %v232_v13 = vpop.permute.xlu0 %231 }
  0x95   : > { %v334_v24 = vpop.permute.xlu1 %333 }
  0x96   : > { %v429_v36 = vpop.permute.xlu0 %428 }
  0x99   : > { %v434_v34 = vpop.permute.xlu1 %433 }
  0x9a   : > { %v528_v45 = vpop.permute.xlu0 %527 }
  0xef   : > { %v727_v14 = vpop.f32.mrb[0].mxu0 }
  0xf0   : > { %v317_v15 = vadd.f32 %v727_v14, %v232_v13  ;;  %v311_v16 = vpop.f32.mrb[1].mxu0 }
  0xf1   : > { %v312_v17 = vadd.f32 %v311_v16, %v227_v12 }
  0xf2   : > { %v321_v18 = vmax.f32 %v317_v15, 0.0 }
  0xf3   : > { %v320_v19 = vmax.f32 %v312_v17, 0.0 }
  0xf5   : > { %v749_v20 = vpack.c.bf16 %v321_v18, %v320_v19 }
  0xf7   : > { %750 = vmatprep.subr.bf16.mxu1 %v749_v20 }
  0xf8   : > { %752 = vmatpush3.bf16.msra.mxu1 %v749_v20 }
  0xfb   : > { %733 = vmatmul.mubr.msk.f32.vlgmr.msra.gmra.mrb[0].mxu1 %vm336_vm2, %v323_v21 }
  0xfc   : > { %746 = vmatprep.mubr.msk.f32.mxu1 %vm336_vm2, %v699_v33 }
 0x1ce   : > { %v734_v25 = vpop.f32.mrb[0].mxu1 }
 0x1cf   : > { %v415_v26 = vadd.f32 %v734_v25, %v334_v24  ;;  %v409_v27 = vpop.f32.mrb[1].mxu1 }
 0x1d0   : > { %v410_v28 = vadd.f32 %v409_v27, %v329_v23 }
 0x1d1   : > { %v419_v29 = vmax.f32 %v415_v26, 0.0 }
 0x1d2   : > { %v418_v30 = vmax.f32 %v410_v28, 0.0 }
 0x1d4   : > { %v753_v31 = vpack.c.bf16 %v419_v29, %v418_v30 }
 0x1d6   : > { %754 = vmatprep.subr.bf16.mxu0 %v753_v31 }
 0x1d7   : > { %756 = vmatpush3.bf16.msra.mxu0 %v753_v31 }
 0x1da   : > { %740 = vmatmul.mubr.msk.f32.vlgmr.msra.gmra.mrb[2].mxu0 %vm336_vm2, %v694_v32 }
 0x2ad   : > { %v741_v35 = vpop.f32.mrb[2].mxu0 }
 0x2ae   : > { %v514_v37 = vadd.f32 %v741_v35, %v434_v34  ;;  %v508_v38 = vpop.f32.mrb[3].mxu0 }
 0x2af   : > { %v509_v39 = vadd.f32 %v508_v38, %v429_v36 }
 0x2b0   : > { %v518_v40 = vmax.f32 %v514_v37, 0.0 }
 0x2b1   : > { %v517_v41 = vmax.f32 %v509_v39, 0.0 }
 0x2b3   : > { %v757_v42 = vpack.c.bf16 %v518_v40, %v517_v41 }
 0x2b5   : > { %758 = vmatprep.subr.bf16.mxu1 %v757_v42 }
 0x2b6   : > { %760 = vmatpush3.bf16.msra.mxu1 %v757_v42 }
 0x2b9   : > { %747 = vmatmul.mubr.msk.f32.vlgmr.msra.gmra.mrb[2].mxu1 %vm336_vm2, %v700_v43 }
 0x38c   : > { %v748_v44 = vpop.f32.mrb[2].mxu1 }
 0x38d   : > { %v606_v46 = vpop.f32.mrb[3].mxu1 }
 0x38e   : > { %v607_v47 = vadd.f32 %v606_v46, %v528_v45 }
 0x390   : > { %614 = vst [vmem:[%s214_s10] sm:$0x1] %v607_v47 }
 0x391   : > { %816 = shalt.err (!%p813_p3)
}
 0x392   : > { %s817_s25 = scalar_lea.hbm %s1010_s14, 16  ;;  %s821_s6 = scalar_lea.hbm %s1057_s5, 32 }
 0x393   : > { %p818_p4 = scmp.ne.s32.totalorder %s1010_s14, %s817_s25  ;;  %p822_p9 = scmp.lt.u32.totalorder %s1010_s14, %s1057_s5 }
 0x394   : > { %p823_p10 = scmp.lt.u32.totalorder %s821_s6, %s817_s25  ;;  %p825_p12 = scmp.lt.u32.totalorder %s817_s25, %s1010_s14 }
 0x395   : > { %p819_p7 = pnand %p818_p4, %p937_p5 }
 0x396   : > { %p824_p11 = por %p823_p10, %p822_p9 }
 0x397   : > { %p820_p8 = pneg %p819_p7 }
 0x398   : > { %p826_p13 = por %p825_p12, %p824_p11 }
 0x39a   : > { %p827_p0 = pnand %p826_p13, %p820_p8 }
 0x39c   : > { %830 = shalt.err (!%p827_p0)
}
 0x39d   : > { %761 = dma.vmem_to_hbm [thread:$0]  (%p937_p5), %s1012_s11, 16, %s1010_s14, %s616_s15  }
 0x39e PF: > { %p767_p1 = scmp.ge.s32.totalorder %s865_s21, 2  ;;  %s640_s9 = sand.u32 1, %s853_s18  }
 0x39f   : > { %s641_s10 = scalar_lea.sflag [#allocation3], %s640_s9 }
 0x3a0   : > { %p764_p2 = pnand %p767_p1, %p941_p6 }
 0x3a2   : > { %848 = dma.done.wait (!%p764_p2), %s641_s10, 16  }
 0x3a3   : > { %850 = vsyncadd (!%p764_p2), %s641_s10, 4294967280  ;;  %p15_p3 = scmp.ge.s32.totalorder %s924_s24, 4   ;;  %s1060_s18 = smov %s857_s19 }
 0x3a4   : > { %s1061_s19 = smov %s861_s20  ;;  %s1062_s20 = smov %s935_s27 }
 0x3a5   : > { %s1063_s21 = smov %s924_s24  ;;  %17 = sbr.rel (!%p15_p3) target bundleno = 3 (0x3), region = 79 }
 0x3ac   :  { %645 = vsyncpa [#allocation3], 1 }
 0x3ad   :  { %647 = vsyncpa [#allocation3 + $0x1], 1 }

</bundles_post_ra>
